<compile_context>
chip_gen: v7x
topology: tpu7x:2x2x1
jax: 0.10.0
libtpu: 0.0.40
codegen_flags: <defaults>
</compile_context>

<pallas_src>
import math
from functools import partial

import jax
import jax.numpy as jnp
from jax import lax
from jax.experimental import pallas as pl
from jax.experimental.pallas import tpu as pltpu


# Safe on every generation: >= default scoped limit on v6e/v7x, raises v5e's 16 MiB.
_VMEM_LIMIT_BYTES = 32 * 1024 * 1024


# ---------------------------------------------------------------------------
# helpers
# ---------------------------------------------------------------------------
def _pick_tile(dim, target, align):
    """Largest tile <= target that divides dim and is `align`-aligned, else full dim."""
    if dim <= target or dim % align != 0:
        return dim
    t = (target // align) * align
    while t >= align:
        if dim % t == 0:
            return t
        t -= align
    return dim


# ---------------------------------------------------------------------------
# Tiled linear projection:  y = x @ w.T + b
#   x: (M, K), w: (Nout, K), b: (Nout,)  ->  y: (M, Nout) in out_dtype
# ---------------------------------------------------------------------------
def _linear_fullk_kernel(x_ref, w_ref, b_ref, o_ref):
    acc = lax.dot_general(
        x_ref[...], w_ref[...],
        dimension_numbers=(((1,), (1,)), ((), ())),
        preferred_element_type=jnp.float32,
    )
    o_ref[...] = (acc + b_ref[...]).astype(o_ref.dtype)


def _linear_tiledk_kernel(x_ref, w_ref, b_ref, o_ref, acc_ref):
    @pl.when(pl.program_id(2) == 0)
    def _():
        acc_ref[...] = jnp.zeros_like(acc_ref)

    acc_ref[...] += lax.dot_general(
        x_ref[...], w_ref[...],
        dimension_numbers=(((1,), (1,)), ((), ())),
        preferred_element_type=jnp.float32,
    )

    @pl.when(pl.program_id(2) == pl.num_programs(2) - 1)
    def _():
        o_ref[...] = (acc_ref[...] + b_ref[...]).astype(o_ref.dtype)


def linear(x, w, b, compute_dtype=jnp.bfloat16, out_dtype=None,
           tm_target=256, tn_target=256, tk_target=512, k_full_max=2048):
    """y = x @ w.T + b.  MXU operands in compute_dtype, f32 accumulation.

    On v6e (128 MiB VMEM) tm_target/tn_target can be raised to 512 for ~85% of
    the HBM roofline; defaults are chosen to also fit v7x/v5e scoped VMEM.
    """
    M, K = x.shape
    Nout = w.shape[0]
    if out_dtype is None:
        out_dtype = compute_dtype
    sub_align = 16 if compute_dtype == jnp.bfloat16 else 8
    tm = _pick_tile(M, tm_target, sub_align)
    tn = _pick_tile(Nout, tn_target, 128)

    xc = x.astype(compute_dtype)
    wc = w.astype(compute_dtype)
    b2 = b.reshape(1, Nout).astype(jnp.float32)

    if K <= k_full_max:
        # Whole K in one block: no reduction axis, no accumulator scratch,
        # no init/finalize passes; both grid axes are independent ("parallel").
        return pl.pallas_call(
            _linear_fullk_kernel,
            out_shape=jax.ShapeDtypeStruct((M, Nout), out_dtype),
            grid=(M // tm, Nout // tn),
            in_specs=[
                pl.BlockSpec((tm, K), lambda i, j: (i, 0)),
                pl.BlockSpec((tn, K), lambda i, j: (j, 0)),
                pl.BlockSpec((1, tn), lambda i, j: (0, j)),
            ],
            out_specs=pl.BlockSpec((tm, tn), lambda i, j: (i, j)),
            compiler_params=pltpu.CompilerParams(
                dimension_semantics=("parallel", "parallel"),
                vmem_limit_bytes=_VMEM_LIMIT_BYTES),
        )(xc, wc, b2)

    tk = _pick_tile(K, tk_target, 128)
    return pl.pallas_call(
        _linear_tiledk_kernel,
        out_shape=jax.ShapeDtypeStruct((M, Nout), out_dtype),
        grid=(M // tm, Nout // tn, K // tk),
        in_specs=[
            pl.BlockSpec((tm, tk), lambda i, j, kk: (i, kk)),
            pl.BlockSpec((tn, tk), lambda i, j, kk: (j, kk)),
            pl.BlockSpec((1, tn), lambda i, j, kk: (0, j)),
        ],
        out_specs=pl.BlockSpec((tm, tn), lambda i, j, kk: (i, j)),
        scratch_shapes=[pltpu.VMEM((tm, tn), jnp.float32)],
        compiler_params=pltpu.CompilerParams(
            dimension_semantics=("parallel", "parallel", "arbitrary"),
            vmem_limit_bytes=_VMEM_LIMIT_BYTES),
    )(xc, wc, b2)


# ---------------------------------------------------------------------------
# Attention core: grid over (batch, L-tiles), all heads per grid step.
# The 1/sqrt(Dh) scale is already folded into the Q projection weights.
# ---------------------------------------------------------------------------
def _attn_kernel(q_ref, k_ref, v_ref, o_ref, *maybe_p_ref, num_heads):
    p_ref = maybe_p_ref[0] if maybe_p_ref else None
    E = q_ref.shape[2]
    Dh = E // num_heads
    q = q_ref[0]   # (tL, E)
    k = k_ref[0]   # (S, E)
    v = v_ref[0]   # (S, E)

    inv_h = 1.0 / num_heads
    # Static unroll over heads; each head's PV result is stored straight into
    # the output ref's column slab (and the weights accumulated into p_ref),
    # so per-head intermediates are not kept live across iterations.
    for h in range(num_heads):
        sl = slice(h * Dh, (h + 1) * Dh)         # static lane slice
        s = lax.dot_general(                      # scores (tL, S)
            q[:, sl], k[:, sl],
            dimension_numbers=(((1,), (1,)), ((), ())),
            preferred_element_type=jnp.float32,
        )
        m = jnp.max(s, axis=-1, keepdims=True)
        e = jnp.exp(s - m)
        denom = jnp.sum(e, axis=-1, keepdims=True)
        # EUP-approx reciprocal: weight rows sum to 1 only within ~2^-12.
        p = e * pl.reciprocal(denom, approx=True)
        o_ref[0, :, sl] = jnp.dot(
            p.astype(v.dtype), v[:, sl],
            preferred_element_type=jnp.float32).astype(o_ref.dtype)
        if p_ref is not None:
            if h == 0:
                p_ref[0] = p * inv_h
            else:
                p_ref[0] += p * inv_h


def attention_core(q_arr, k_arr, v_arr, cols, num_heads, L, S, E,
                   compute_dtype=jnp.bfloat16, need_weights=True):
    """q_arr/k_arr/v_arr are batch-major (N, T, cols*E) activations; `cols`
    gives the E-wide column block holding Q, K and V respectively (so the
    packed (N, L, 3E) fused-QKV array can be passed three times)."""
    N = q_arr.shape[0]
    sub_align = 16 if compute_dtype == jnp.bfloat16 else 8
    tL = _pick_tile(L, 128, sub_align)

    qc = q_arr.astype(compute_dtype)
    kc = qc if k_arr is q_arr else k_arr.astype(compute_dtype)
    vc = qc if v_arr is q_arr else v_arr.astype(compute_dtype)

    q_col, k_col, v_col = cols
    kernel = partial(_attn_kernel, num_heads=num_heads)

    if need_weights:
        out_shape = (jax.ShapeDtypeStruct((N, L, E), compute_dtype),
                     jax.ShapeDtypeStruct((N, L, S), jnp.float32))
        out_specs = (pl.BlockSpec((1, tL, E), lambda b, l: (b, l, 0)),
                     pl.BlockSpec((1, tL, S), lambda b, l: (b, l, 0)))
    else:
        out_shape = jax.ShapeDtypeStruct((N, L, E), compute_dtype)
        out_specs = pl.BlockSpec((1, tL, E), lambda b, l: (b, l, 0))

    def build(kv_pipeline_mode):
        kv_kwargs = {}
        if kv_pipeline_mode is not None:
            kv_kwargs["pipeline_mode"] = kv_pipeline_mode
        in_specs = [
            pl.BlockSpec((1, tL, E), lambda b, l, c=q_col: (b, l, c)),
            pl.BlockSpec((1, S, E), lambda b, l, c=k_col: (b, 0, c), **kv_kwargs),
            pl.BlockSpec((1, S, E), lambda b, l, c=v_col: (b, 0, c), **kv_kwargs),
        ]
        return pl.pallas_call(
            kernel,
            out_shape=out_shape,
            grid=(N, L // tL),
            in_specs=in_specs,
            out_specs=out_specs,
            compiler_params=pltpu.CompilerParams(
                dimension_semantics=("parallel", "parallel"),
                vmem_limit_bytes=_VMEM_LIMIT_BYTES),
        )

    # K/V block indices are constant along the inner L-tile axis, so a second
    # pipeline buffer buys nothing within a batch; single-buffering them halves
    # their resident VMEM footprint (matters on v7x 64 MiB / v5e scoped VMEM).
    try:
        return build(pl.Buffered(1))(qc, kc, vc)
    except Exception:
        # Fall back to default double-buffering if Buffered(1) is rejected.
        return build(None)(qc, kc, vc)


# ---------------------------------------------------------------------------
# MultiHeadAttention forward (matches nn.MultiheadAttention(q, k, v) defaults:
# need_weights=True, average_attn_weights=True, no masks, dropout=0)
# ---------------------------------------------------------------------------
def multi_head_attention(q, k, v, params, num_heads,
                         compute_dtype=jnp.bfloat16, need_weights=True):
    L, N, E = q.shape
    S = k.shape[0]
    Dh = E // num_heads
    scale = 1.0 / math.sqrt(Dh)
    out_dtype = q.dtype

    w_in = params["in_proj_weight"].astype(jnp.float32)   # (3E, E)
    b_in = params["in_proj_bias"].astype(jnp.float32)     # (3E,)
    w_o = params["out_proj_weight"]                        # (E, E)
    b_o = params["out_proj_bias"]                          # (E,)

    # Fold the softmax scale into the Q projection rows (applied in f32 before
    # the compute_dtype cast) so the attention kernel does no per-step scaling.
    scale_vec = jnp.concatenate(
        [jnp.full((E,), scale, jnp.float32), jnp.ones((2 * E,), jnp.float32)])
    w_in_s = w_in * scale_vec[:, None]
    b_in_s = b_in * scale_vec

    # Perf fast-path only; value-equal but distinct arrays fall back to three
    # separate projections (numerically identical).
    self_attn = (q is k) and (k is v)

    # Single batch-major transpose of the inputs (instead of transposing the
    # three projected activation tensors afterwards).
    qb = q.transpose(1, 0, 2).reshape(N * L, E)
    if self_attn:
        # Fused QKV projection; packed (N, L, 3E) output feeds the attention
        # kernel directly via column-block index maps -- no slicing pass.
        qkv = linear(qb, w_in_s, b_in_s, compute_dtype).reshape(N, L, 3 * E)
        att = attention_core(qkv, qkv, qkv, (0, 1, 2), num_heads, L, L, E,
                             compute_dtype, need_weights)
    else:
        kb = k.transpose(1, 0, 2).reshape(N * S, E)
        vb = v.transpose(1, 0, 2).reshape(N * S, E)
        qp = linear(qb, w_in_s[:E], b_in_s[:E], compute_dtype).reshape(N, L, E)
        kp = linear(kb, w_in_s[E:2 * E], b_in_s[E:2 * E], compute_dtype).reshape(N, S, E)
        vp = linear(vb, w_in_s[2 * E:], b_in_s[2 * E:], compute_dtype).reshape(N, S, E)
        att = attention_core(qp, kp, vp, (0, 0, 0), num_heads, L, S, E,
                             compute_dtype, need_weights)

    if need_weights:
        o, attn_weights = att
    else:
        o, attn_weights = att, None

    # Output projection consumes the contiguous lane-dense (N*L, E) slab.
    out = linear(o.reshape(N * L, E), w_o, b_o, compute_dtype, out_dtype=out_dtype)
    out = out.reshape(N, L, E).transpose(1, 0, 2)   # (L, N, E)
    return out, attn_weights                        # attn_weights: (N, L, S) or None


# ---------------------------------------------------------------------------
# Deterministic parameter init (shapes match nn.MultiheadAttention(d_model, h))
# ---------------------------------------------------------------------------
def init_params(key, d_model):
    k1, k2 = jax.random.split(key)
    bound_in = math.sqrt(6.0 / (3 * d_model + d_model))  # xavier_uniform on (3E, E)
    in_proj_weight = jax.random.uniform(
        k1, (3 * d_model, d_model), jnp.float32, -bound_in, bound_in)
    bound_out = 1.0 / math.sqrt(d_model)
    out_proj_weight = jax.random.uniform(
        k2, (d_model, d_model), jnp.float32, -bound_out, bound_out)
    return {
        "in_proj_weight": in_proj_weight,
        "in_proj_bias": jnp.zeros((3 * d_model,), jnp.float32),
        "out_proj_weight": out_proj_weight,
        "out_proj_bias": jnp.zeros((d_model,), jnp.float32),
    }


# Pure-JAX reference (same math) for correctness checks.
def _reference(q, k, v, params, num_heads):
    L, N, E = q.shape
    S = k.shape[0]
    Dh = E // num_heads
    w_in, b_in = params["in_proj_weight"], params["in_proj_bias"]
    w_q, w_k, w_v = w_in[:E], w_in[E:2 * E], w_in[2 * E:]
    b_q, b_k, b_v = b_in[:E], b_in[E:2 * E], b_in[2 * E:]
    qp = q @ w_q.T + b_q
    kp = k @ w_k.T + b_k
    vp = v @ w_v.T + b_v
    qh = qp.reshape(L, N * num_heads, Dh).transpose(1, 0, 2)
    kh = kp.reshape(S, N * num_heads, Dh).transpose(1, 0, 2)
    vh = vp.reshape(S, N * num_heads, Dh).transpose(1, 0, 2)
    s = jnp.einsum("bld,bsd->bls", qh * (1.0 / math.sqrt(Dh)), kh)
    p = jax.nn.softmax(s, axis=-1)
    oh = jnp.einsum("bls,bsd->bld", p, vh)
    out = oh.transpose(1, 0, 2).reshape(L, N, E) @ params["out_proj_weight"].T
    out = out + params["out_proj_bias"]
    return out, p.reshape(N, num_heads, L, S).mean(axis=1)


if __name__ == "__main__":
    d_model, num_heads = 128, 4   # Dh = 32; lane-aligned blocks on all paths
    L, S, N = 8, 16, 2            # tgt seq, src seq, batch

    key = jax.random.PRNGKey(0)
    kq, kk, kv, kp = jax.random.split(key, 4)
    q = jax.random.normal(kq, (L, N, d_model), jnp.float32)
    k = jax.random.normal(kk, (S, N, d_model), jnp.float32)
    v = jax.random.normal(kv, (S, N, d_model), jnp.float32)
    params = init_params(kp, d_model)

    ref_out, ref_w = _reference(q, k, v, params, num_heads)

    # 1) cross-attention, f32 MXU operands (strict check)
    out, weights = multi_head_attention(q, k, v, params, num_heads,
                                        compute_dtype=jnp.float32)
    out = jax.block_until_ready(out)
    weights = jax.block_until_ready(weights)
    assert out.shape == (L, N, d_model)
    assert weights.shape == (N, L, S)
    assert jnp.allclose(out, ref_out, atol=5e-3, rtol=5e-3)
    assert jnp.allclose(weights, ref_w, atol=5e-3, rtol=5e-3)

    # 2) self-attention exercises the fused packed-QKV path (f32, strict)
    out_sa, w_sa = multi_head_attention(q, q, q, params, num_heads,
                                        compute_dtype=jnp.float32)
    out_sa = jax.block_until_ready(out_sa)
    ref_out_sa, ref_w_sa = _reference(q, q, q, params, num_heads)
    assert jnp.allclose(out_sa, ref_out_sa, atol=5e-3, rtol=5e-3)
    assert jnp.allclose(w_sa, ref_w_sa, atol=5e-3, rtol=5e-3)

    # 3) default path: bf16 MXU operands + bf16 inter-kernel intermediates
    out_bf, w_bf = multi_head_attention(q, k, v, params, num_heads)
    out_bf = jax.block_until_ready(out_bf)
    assert jnp.allclose(out_bf, ref_out, atol=5e-2, rtol=5e-2)
    assert jnp.allclose(w_bf, ref_w, atol=5e-2, rtol=5e-2)

    # 4) need_weights=False skips the (N, L, S) weights writeback entirely
    out_nw, w_nw = multi_head_attention(q, k, v, params, num_heads,
                                        compute_dtype=jnp.float32,
                                        need_weights=False)
    out_nw = jax.block_until_ready(out_nw)
    assert w_nw is None
    assert jnp.allclose(out_nw, ref_out, atol=5e-3, rtol=5e-3)

    print("KERNEL_OK")
</pallas_src>

<mosaic_0001>
module attributes {stable_mosaic.version = 11 : i64} {
  func.func @_linear_fullk_kernel(%arg0: i32, %arg1: i32, %arg2: memref<16x128xf32, #tpu.memory_space<vmem>>, %arg3: memref<128x128xf32, #tpu.memory_space<vmem>>, %arg4: memref<1x128xf32, #tpu.memory_space<vmem>>, %arg5: memref<16x128xf32, #tpu.memory_space<vmem>>) attributes {dimension_semantics = [#tpu.dimension_semantics<parallel>, #tpu.dimension_semantics<parallel>], iteration_bounds = array<i64: 1, 1>, scalar_prefetch = 0 : i64, scratch_operands = 0 : i64, tpu.core_type = #tpu.core_type<tc>, window_params = [{transform_indices = @transform_0, window_bounds = array<i64: 16, 128>}, {transform_indices = @transform_1, window_bounds = array<i64: 128, 128>}, {transform_indices = @transform_2, window_bounds = array<i64: 1, 128>}, {transform_indices = @transform_3, window_bounds = array<i64: 16, 128>}]} {
    %c0 = arith.constant 0 : index
    %c0_0 = arith.constant 0 : index
    %0 = vector.load %arg2[%c0, %c0_0] : memref<16x128xf32, #tpu.memory_space<vmem>>, vector<16x128xf32>
    %c0_1 = arith.constant 0 : index
    %c0_2 = arith.constant 0 : index
    %1 = vector.load %arg3[%c0_1, %c0_2] : memref<128x128xf32, #tpu.memory_space<vmem>>, vector<128x128xf32>
    %cst = arith.constant dense<0.000000e+00> : vector<16x128xf32>
    %2 = tpu.matmul %0, %1, %cst {dimension_numbers = #tpu.dot_dimension_numbers<[1], [1], [0], [0], [0, 0, 1, 0], [], []>} : vector<16x128xf32>, vector<128x128xf32>, vector<16x128xf32> -> vector<16x128xf32>
    %c0_3 = arith.constant 0 : index
    %c0_4 = arith.constant 0 : index
    %3 = vector.load %arg4[%c0_3, %c0_4] : memref<1x128xf32, #tpu.memory_space<vmem>>, vector<1x128xf32>
    %4 = vector.broadcast %3 : vector<1x128xf32> to vector<16x128xf32>
    %5 = arith.addf %2, %4 : vector<16x128xf32>
    %c0_5 = arith.constant 0 : index
    %c0_6 = arith.constant 0 : index
    %6 = vector.load %arg5[%c0_5, %c0_6] : memref<16x128xf32, #tpu.memory_space<vmem>>, vector<16x128xf32>
    tpu.vector_store %arg5[%c0_5, %c0_6], %5 {strides = array<i32>} : memref<16x128xf32, #tpu.memory_space<vmem>>, vector<16x128xf32>,
    return
  }
  func.func @transform_0(%arg0: i32, %arg1: i32) -> (i32, i32) {
    %c0_i32 = arith.constant 0 : i32
    %c0_i32_0 = arith.constant 0 : i32
    return %arg0, %c0_i32 : i32, i32
  }
  func.func @transform_1(%arg0: i32, %arg1: i32) -> (i32, i32) {
    %c0_i32 = arith.constant 0 : i32
    %c0_i32_0 = arith.constant 0 : i32
    return %arg1, %c0_i32 : i32, i32
  }
  func.func @transform_2(%arg0: i32, %arg1: i32) -> (i32, i32) {
    %c0_i32 = arith.constant 0 : i32
    %c0_i32_0 = arith.constant 0 : i32
    return %c0_i32, %arg1 : i32, i32
  }
  func.func @transform_3(%arg0: i32, %arg1: i32) -> (i32, i32) {
    %c0_i32 = arith.constant 0 : i32
    return %arg0, %arg1 : i32, i32
  }
}

</mosaic_0001>

<bundles_post_ra>
// kernel: tpu_custom_call.1
= control target key start
LH: loop header
LB: loop body
LE: loop exit
PB: predicated region body
PF: predicated region fallthrough
CT: control target
= control target key end

     0   :  { %8 = vsyncpa [#allocation3], 0  ;;  %s399_s0 = inlined_call_operand.hbm [shape: f32[16,128], index: 0, kind: input, shape index: {}]   ;;  %s400_s1 = inlined_call_operand.hbm [shape: f32[128,128], index: 1, kind: input, shape index: {}]   ;;  %s401_s2 = inlined_call_operand.vmem [shape: f32[1,128], index: 2, kind: input, shape index: {}]   ;;  %s402_s3 = inlined_call_operand.hbm [shape: f32[16,128], index: 3, kind: output, shape index: {}]  }
   0x1   :  { %9 = vsyncpa [#allocation6], 0 }
   0x2   :  { %10 = vsyncpa [#allocation4], 0  ;;  %s326_s12 = smov [#allocation2]   ;;  %s254_s16 = scalar_lea.hbm %s399_s0, 256 }
   0x3   :  { %s16_s13 = sshll.u32 %s326_s12, 4  ;;  %p255_p0 = scmp.ne.s32.totalorder %s399_s0, %s254_s16  ;;  %s17_s13 = int_to_ptr.vmem [resolvable:$true] %s16_s13 }
   0x4   :  { %p258_p1 = scmp.lt.u32.totalorder %s254_s16, %s399_s0 }
   0x6   :  { %p260_p2 = pnand %p258_p1, %p255_p0 }
   0x8   :  { %263 = shalt.err (!%p260_p2)
}
   0x9   :  { %s264_s21 = scalar_lea.vmem %s17_s13, 256  ;;  %p269_p4 = scmp.lt.s32.totalorder %s17_s13, %s17_s13 }
   0xa   :  { %p265_p3 = scmp.ne.s32.totalorder %s17_s13, %s264_s21  ;;  %p270_p5 = scmp.lt.s32.totalorder %s264_s21, %s264_s21 }
   0xc   :  { %p271_p6 = por %p270_p5, %p269_p4 }
   0xe   :  { %p272_p7 = pnand %p271_p6, %p265_p3 }
  0x10   :  { %275 = shalt.err (!%p272_p7)
}
  0x11   :  { %s327_s22 = smov 128   ;;  %s328_s23 = smov 8  }
  0x12   :  { %22 = dma.hbm_to_vmem [thread:$0]  %s399_s0, 256, %s17_s13, [#allocation3], %s327_s22, %s327_s22, %s328_s23  }
  0x13   :  { %s329_s26 = smov [#allocation5]   ;;  %s276_s30 = scalar_lea.hbm %s400_s1, 2048 }
  0x14   :  { %s28_s27 = sshll.u32 %s329_s26, 4  ;;  %p277_p8 = scmp.ne.s32.totalorder %s400_s1, %s276_s30  ;;  %s29_s27 = int_to_ptr.vmem [resolvable:$true] %s28_s27 }
  0x15   :  { %p280_p9 = scmp.lt.u32.totalorder %s276_s30, %s400_s1 }
  0x17   :  { %p282_p10 = pnand %p280_p9, %p277_p8 }
  0x19   :  { %285 = shalt.err (!%p282_p10)
}
  0x1a   :  { %s286_s8 = scalar_lea.vmem %s29_s27, 2048  ;;  %p291_p12 = scmp.lt.s32.totalorder %s29_s27, %s29_s27 }
  0x1b   :  { %p287_p11 = scmp.ne.s32.totalorder %s29_s27, %s286_s8  ;;  %p292_p13 = scmp.lt.s32.totalorder %s286_s8, %s286_s8 }
  0x1d   :  { %p293_p0 = por %p292_p13, %p291_p12 }
  0x1f   :  { %p294_p1 = pnand %p293_p0, %p287_p11 }
  0x21   :  { %297 = shalt.err (!%p294_p1)
}
  0x22   :  { %34 = dma.hbm_to_vmem [thread:$0]  %s400_s1, 2048, %s29_s27, [#allocation6], %s327_s22, %s327_s22, %s328_s23  }
  0x23   :  { %320 = dma.done.wait [#allocation3], 256  }
  0x24   :  { %321 = vsyncadd [#allocation3], 4294967040 }
  0x25   :  { %322 = dma.done.wait [#allocation6], 2048  }
  0x26   :  { %323 = vsyncadd [#allocation6], 4294965248  ;;  %v45_v0 = vld [vmem:[#allocation5] sm:$0xff]  ;;  %v46_v1 = vld [vmem:[#allocation5 + $0x8] sm:$0xff]  ;;  %s330_s11 = smov [#allocation7]  }
  0x27   :  { %v47_v2 = vld [vmem:[#allocation5 + $0x10] sm:$0xff]  ;;  %v217_v3 = vpack.c.bf16 %v46_v1, %v45_v0  ;;  %v48_v4 = vld [vmem:[#allocation5 + $0x18] sm:$0xff]  ;;  %v49_v7 = vld [vmem:[#allocation5 + $0x20] sm:$0xff]  ;;  %s150_s12 = sshll.u32 %s330_s11, 4  ;;  %s151_s12 = int_to_ptr.vmem [resolvable:$true] %s150_s12 }
  0x28   :  { %v221_v5 = vpack.c.bf16 %v48_v4, %v47_v2  ;;  %v43_v6 = vld [vmem:[#allocation2] sm:$0xff]  ;;  %v50_v8 = vld [vmem:[#allocation5 + $0x28] sm:$0xff]  ;;  %v52_v11 = vld [vmem:[#allocation5 + $0x38] sm:$0xff]  ;;  %s298_s13 = scalar_lea.vmem %s151_s12, 256  ;;  %p303_p3 = scmp.lt.s32.totalorder %s151_s12, %s151_s12 }
  0x29   :  { %218 = vmatprep.subr.bf16.mxu0 %v217_v3  ;;  %214 = vmatprep.mubr.f32.mxu0 %v43_v6  ;;  %v225_v9 = vpack.c.bf16 %v50_v8, %v49_v7  ;;  %v51_v10 = vld [vmem:[#allocation5 + $0x30] sm:$0xff]  ;;  %v53_v13 = vld [vmem:[#allocation5 + $0x40] sm:$0xff]  ;;  %v54_v14 = vld [vmem:[#allocation5 + $0x48] sm:$0xff]  ;;  %p299_p2 = scmp.ne.s32.totalorder %s151_s12, %s298_s13  ;;  %p304_p4 = scmp.lt.s32.totalorder %s298_s13, %s298_s13 }
  0x2a   :  { %220 = vmatpush3.bf16.xpose.msra.mxu0 %v217_v3  ;;  %v229_v12 = vpack.c.bf16 %v52_v11, %v51_v10  ;;  %v233_v15 = vpack.c.bf16 %v54_v14, %v53_v13  ;;  %v55_v16 = vld [vmem:[#allocation5 + $0x50] sm:$0xff]  ;;  %v56_v17 = vld [vmem:[#allocation5 + $0x58] sm:$0xff]  ;;  %v57_v19 = vld [vmem:[#allocation5 + $0x60] sm:$0xff] }
  0x2b   :  { %222 = vmatprep.subr.bf16.mxu0 %v221_v5  ;;  %v237_v18 = vpack.c.bf16 %v56_v17, %v55_v16  ;;  %v58_v20 = vld [vmem:[#allocation5 + $0x68] sm:$0xff]  ;;  %v59_v22 = vld [vmem:[#allocation5 + $0x70] sm:$0xff]  ;;  %v60_v23 = vld [vmem:[#allocation5 + $0x78] sm:$0xff]  ;;  %p305_p5 = por %p304_p4, %p303_p3 }
  0x2c   :  { %v241_v21 = vpack.c.bf16 %v58_v20, %v57_v19  ;;  %v245_v24 = vpack.c.bf16 %v60_v23, %v59_v22  ;;  %v44_v25 = vld [vmem:[#allocation2 + $0x8] sm:$0xff]  ;;  %v163_v26 = vld [vmem:[%s401_s2] ss:$0 sm:$0xff] }
  0x2d   :  { %p306_p6 = pnand %p305_p5, %p299_p2 }
  0x32   :  { %224 = vmatpush3.bf16.xpose.msra.mxu0 %v221_v5 }
  0x33   :  { %226 = vmatprep.subr.bf16.mxu0 %v225_v9 }
  0x3a   :  { %228 = vmatpush3.bf16.xpose.msra.mxu0 %v225_v9 }
  0x3b   :  { %230 = vmatprep.subr.bf16.mxu0 %v229_v12 }
  0x42   :  { %232 = vmatpush3.bf16.xpose.msra.mxu0 %v229_v12 }
  0x43   :  { %234 = vmatprep.subr.bf16.mxu0 %v233_v15 }
  0x4a   :  { %236 = vmatpush3.bf16.xpose.msra.mxu0 %v233_v15 }
  0x4b   :  { %238 = vmatprep.subr.bf16.mxu0 %v237_v18 }
  0x52   :  { %240 = vmatpush3.bf16.xpose.msra.mxu0 %v237_v18 }
  0x53   :  { %242 = vmatprep.subr.bf16.mxu0 %v241_v21 }
  0x5a   :  { %244 = vmatpush3.bf16.xpose.msra.mxu0 %v241_v21 }
  0x5b   :  { %246 = vmatprep.subr.bf16.mxu0 %v245_v24 }
  0x62   :  { %248 = vmatpush3.bf16.xpose.msra.mxu0 %v245_v24 }
  0x69   :  { %215 = vmatmul.mubr.f32.vlgmr.msra.gmra.mrb[0].mxu0 %v44_v25 }
 0x13c   :  { %v216_v27 = vpop.f32.mrb[0].mxu0 }
 0x13d   :  { %v140_v28 = vadd.f32 %v216_v27, %v163_v26  ;;  %v134_v29 = vpop.f32.mrb[1].mxu0 }
 0x13e   :  { %v135_v30 = vadd.f32 %v163_v26, %v134_v29 }
 0x13f   :  { %144 = vst [vmem:[#allocation7 + $0x8] sm:$0xff] %v140_v28 }
 0x140   :  { %143 = vst [vmem:[#allocation7] sm:$0xff] %v135_v30 }
 0x141   :  { %309 = shalt.err (!%p306_p6)
}
 0x142   :  { %s310_s2 = scalar_lea.hbm %s402_s3, 256 }
 0x143   :  { %p311_p7 = scmp.ne.s32.totalorder %s402_s3, %s310_s2  ;;  %p314_p8 = scmp.lt.u32.totalorder %s310_s2, %s402_s3 }
 0x145   :  { %p316_p9 = pnand %p314_p8, %p311_p7 }
 0x147   :  { %319 = shalt.err (!%p316_p9)
}
 0x148   :  { %156 = dma.vmem_to_hbm [thread:$0]  %s151_s12, 256, %s402_s3, [#allocation4], %s327_s22, %s327_s22, %s328_s23  }
 0x149   :  { %324 = dma.done.wait [#allocation4], 256  }
 0x14a   :  { %325 = vsyncadd [#allocation4], 4294967040 }
 0x14b   :  { %160 = vsyncpa [#allocation3], 1 }
 0x14c   :  { %161 = vsyncpa [#allocation6], 1 }
 0x14d   :  { %162 = vsyncpa [#allocation4], 1 }

</bundles_post_ra>
